<compile_context>
chip_gen: v5e
topology: v5e:2x2
jax: 0.10.0
libtpu: 0.0.40
codegen_flags: <defaults>
</compile_context>

<pallas_src>
import jax
import jax.numpy as jnp
from jax import lax
from jax.experimental import pallas as pl
from jax.experimental.pallas import tpu as pltpu

INPUT_SIZE = 60
NUM_CLASSES = 3
CLASS_PAD = 8            # compute width for the class axis (tiny, lane-masked)
NEG_LARGE = -1e30        # finite "-inf" for padded class lanes


def _round_up(x, m):
    return ((x + m - 1) // m) * m


def _lung_classifier_kernel(x_ref, wt_ref, o_ref):
    # x_ref: (tb, D) f32, wt_ref: (D, CLASS_PAD) f32, o_ref: (tb, NUM_CLASSES) f32
    x = x_ref[...]
    wt = wt_ref[...]
    # logits[b, c] = sum_d x[b, d] * wt[d, c]  (native [M,K]x[K,N] layout for the MXU)
    logits = jnp.dot(x, wt, preferred_element_type=jnp.float32)      # (tb, CLASS_PAD)
    # Mask padded class lanes so they do not corrupt the log-softmax reduction.
    col = lax.broadcasted_iota(jnp.int32, logits.shape, 1)
    logits = jnp.where(col < NUM_CLASSES, logits, NEG_LARGE)
    # Numerically stable log-softmax along the class axis (f32 throughout).
    m = jnp.max(logits, axis=-1, keepdims=True)
    shifted = logits - m
    lse = jnp.log(jnp.sum(jnp.exp(shifted), axis=-1, keepdims=True))
    # Store only the valid classes (narrow masked store; HBM writeback is 12 B/row).
    o_ref[...] = (shifted - lse)[:, :NUM_CLASSES]


def _choose_batch_tile(B, block_b):
    tb = min(block_b, _round_up(B, 8))
    # Keep >= 2 grid steps for large batches so a v7x chip can shard the "parallel"
    # batch axis across both TensorCores; small batches stay at a single step
    # (minimizes fixed per-step overhead on single-TC v5e/v6e).
    if B >= 1024 and pl.cdiv(B, tb) < 2:
        tb = max(8, _round_up(pl.cdiv(B, 2), 8))
    return tb


def lung_classifier_forward(x, weight, *, block_b=4096):
    """x: [B, INPUT_SIZE] f32, weight: [NUM_CLASSES, INPUT_SIZE] f32 -> [B, NUM_CLASSES] f32."""
    B, D = x.shape
    C, D2 = weight.shape
    assert D == D2 == INPUT_SIZE and C == NUM_CLASSES

    x = x.astype(jnp.float32)
    weight = weight.astype(jnp.float32)

    tb = _choose_batch_tile(B, block_b)
    grid = (pl.cdiv(B, tb),)

    # Pre-transpose + pad the weight once in the wrapper: [C, D] -> [D, CLASS_PAD].
    wt = jnp.pad(weight.T, ((0, 0), (0, CLASS_PAD - C)))

    out = pl.pallas_call(
        _lung_classifier_kernel,
        out_shape=jax.ShapeDtypeStruct((B, NUM_CLASSES), jnp.float32),
        grid=grid,
        in_specs=[
            pl.BlockSpec((tb, D), lambda i: (i, 0)),            # x: tiled over batch (ragged last block masked by Pallas)
            pl.BlockSpec((D, CLASS_PAD), lambda i: (0, 0)),     # weight: resident in VMEM
        ],
        out_specs=pl.BlockSpec((tb, NUM_CLASSES), lambda i: (i, 0)),
        compiler_params=pltpu.CompilerParams(
            dimension_semantics=("parallel",),
        ),
        cost_estimate=pl.CostEstimate(
            flops=2 * B * D * CLASS_PAD,
            transcendentals=B * CLASS_PAD,
            bytes_accessed=(B * D + D * CLASS_PAD + B * NUM_CLASSES) * 4,
        ),
    )(x, wt)
    return out


def _reference(x, weight):
    logits = x @ weight.T
    return jax.nn.log_softmax(logits, axis=1)


if __name__ == "__main__":
    key = jax.random.PRNGKey(0)
    kx, kw = jax.random.split(key)

    B = 8  # small batch
    x = jax.random.normal(kx, (B, INPUT_SIZE), dtype=jnp.float32)
    # Deterministic init mimicking nn.Linear default (uniform in +/- 1/sqrt(fan_in))
    bound = 1.0 / (INPUT_SIZE ** 0.5)
    weight = jax.random.uniform(
        kw, (NUM_CLASSES, INPUT_SIZE), dtype=jnp.float32, minval=-bound, maxval=bound
    )

    out = lung_classifier_forward(x, weight)
    out = jax.block_until_ready(out)

    ref = _reference(x, weight)
    assert out.shape == (B, NUM_CLASSES)
    assert jnp.allclose(out, ref, atol=1e-5, rtol=1e-5), "mismatch vs reference"

    # Also exercise a batch that is large, non-multiple of the tile size and of 8
    # (ragged last block + >= 2 grid steps path).
    B2 = 1037
    x2 = jax.random.normal(jax.random.PRNGKey(1), (B2, INPUT_SIZE), dtype=jnp.float32)
    out2 = jax.block_until_ready(lung_classifier_forward(x2, weight))
    ref2 = _reference(x2, weight)
    assert out2.shape == (B2, NUM_CLASSES)
    assert jnp.allclose(out2, ref2, atol=1e-5, rtol=1e-5), "mismatch vs reference (large B)"

    print("KERNEL_OK")
</pallas_src>

<mosaic_0001>
module attributes {stable_mosaic.version = 11 : i64} {
  func.func @_lung_classifier_kernel(%arg0: i32, %arg1: memref<8x60xf32, #tpu.memory_space<vmem>>, %arg2: memref<60x8xf32, #tpu.memory_space<vmem>>, %arg3: memref<8x3xf32, #tpu.memory_space<vmem>>) attributes {dimension_semantics = [#tpu.dimension_semantics<parallel>], iteration_bounds = array<i64: 1>, scalar_prefetch = 0 : i64, scratch_operands = 0 : i64, tpu.core_type = #tpu.core_type<tc>, window_params = [{transform_indices = @transform_0, window_bounds = array<i64: 8, 60>}, {pipeline_mode = #tpu.pipeline_mode<synchronous>, transform_indices = @transform_1, window_bounds = array<i64: 60, 8>}, {transform_indices = @transform_2, window_bounds = array<i64: 8, 3>}]} {
    %c0 = arith.constant 0 : index
    %c0_0 = arith.constant 0 : index
    %0 = vector.load %arg1[%c0, %c0_0] : memref<8x60xf32, #tpu.memory_space<vmem>>, vector<8x60xf32>
    %c0_1 = arith.constant 0 : index
    %c0_2 = arith.constant 0 : index
    %1 = vector.load %arg2[%c0_1, %c0_2] : memref<60x8xf32, #tpu.memory_space<vmem>>, vector<60x8xf32>
    %cst = arith.constant dense<0.000000e+00> : vector<8x8xf32>
    %2 = tpu.matmul %0, %1, %cst {dimension_numbers = #tpu.dot_dimension_numbers<[1], [0], [0], [1], [0, 0, 1, 1], [], []>} : vector<8x60xf32>, vector<60x8xf32>, vector<8x8xf32> -> vector<8x8xf32>
    %3 = tpu.iota {dimensions = array<i32: 1>} : vector<8x8xi32>
    %c3_i32 = arith.constant 3 : i32
    %4 = vector.broadcast %c3_i32 : i32 to vector<8x8xi32>
    %5 = arith.cmpi slt, %3, %4 : vector<8x8xi32>
    %cst_3 = arith.constant -1.000000e+30 : f32
    %6 = vector.broadcast %cst_3 : f32 to vector<8x8xf32>
    %7 = arith.select %5, %2, %6 : vector<8x8xi1>, vector<8x8xf32>
    %cst_4 = arith.constant dense<0xFF800000> : vector<8xf32>
    %8 = vector.multi_reduction <maximumf>, %7, %cst_4 [1] : vector<8x8xf32> to vector<8xf32>
    %9 = vector.shape_cast %8 : vector<8xf32> to vector<8x1xf32>
    %10 = vector.broadcast %9 : vector<8x1xf32> to vector<8x8xf32>
    %11 = arith.subf %7, %10 : vector<8x8xf32>
    %12 = math.exp %11 : vector<8x8xf32>
    %cst_5 = arith.constant dense<0.000000e+00> : vector<8xf32>
    %13 = vector.multi_reduction <add>, %12, %cst_5 [1] : vector<8x8xf32> to vector<8xf32>
    %14 = vector.shape_cast %13 : vector<8xf32> to vector<8x1xf32>
    %15 = math.log %14 : vector<8x1xf32>
    %16 = vector.broadcast %15 : vector<8x1xf32> to vector<8x8xf32>
    %17 = arith.subf %11, %16 : vector<8x8xf32>
    %18 = vector.extract_strided_slice %17 {offsets = [0, 0], sizes = [8, 3], strides = [1, 1]} : vector<8x8xf32> to vector<8x3xf32>
    %c0_6 = arith.constant 0 : index
    %c0_7 = arith.constant 0 : index
    %19 = vector.load %arg3[%c0_6, %c0_7] : memref<8x3xf32, #tpu.memory_space<vmem>>, vector<8x3xf32>
    tpu.vector_store %arg3[%c0_6, %c0_7], %18 {strides = array<i32>} : memref<8x3xf32, #tpu.memory_space<vmem>>, vector<8x3xf32>,
    return
  }
  func.func @transform_0(%arg0: i32) -> (i32, i32) {
    %c0_i32 = arith.constant 0 : i32
    %c0_i32_0 = arith.constant 0 : i32
    return %arg0, %c0_i32 : i32, i32
  }
  func.func @transform_1(%arg0: i32) -> (i32, i32) {
    %c0_i32 = arith.constant 0 : i32
    %c0_i32_0 = arith.constant 0 : i32
    %c0_i32_1 = arith.constant 0 : i32
    return %c0_i32, %c0_i32_0 : i32, i32
  }
  func.func @transform_2(%arg0: i32) -> (i32, i32) {
    %c0_i32 = arith.constant 0 : i32
    %c0_i32_0 = arith.constant 0 : i32
    return %arg0, %c0_i32 : i32, i32
  }
}

</mosaic_0001>

<bundles_post_ra>
// kernel: tpu_custom_call.1
= control target key start
LH: loop header
LB: loop body
LE: loop exit
PB: predicated region body
PF: predicated region fallthrough
CT: control target
= control target key end

     0   :  { %vm24_vm0 = vcmask 1043456   ;;  %vm20_vm1 = vcmask 490496   ;;  %v48_v9 = vlaneseq  ;;  %vm52_vm3 = vcmask 64512   ;;  %s122_s1 = inlined_call_operand.vmem [shape: f32[60,8], index: 1, kind: input, shape index: {}]   ;;  %s123_s0 = inlined_call_operand.vmem [shape: f32[8,60], index: 0, kind: input, shape index: {}]   ;;  %s124_s2 = inlined_call_operand.vmem [shape: f32[8,3], index: 2, kind: output, shape index: {}]  }
   0x1   :  { %v19_v0 = vld [vmem:[%s122_s1 + $0x38] sm:$0xf]  ;;  %v18_v1 = vld [vmem:[%s122_s1 + $0x30] sm:$0xff]  ;;  %v17_v2 = vld [vmem:[%s122_s1 + $0x28] sm:$0xff]  ;;  %vm65_vm4 = vcmask 23552  }
   0x2   :  { %71 = vmatpush.msk.msra.mxu0 %vm24_vm0, %v19_v0  ;;  %v16_v3 = vld [vmem:[%s122_s1 + $0x20] sm:$0xff]  ;;  %v15_v4 = vld [vmem:[%s122_s1 + $0x18] sm:$0xff]  ;;  %v14_v5 = vld [vmem:[%s122_s1 + $0x10] sm:$0xff]  ;;  %v49_v10 = vand.u32 127, %v48_v9 }
   0x3   :  { %v13_v6 = vld [vmem:[%s122_s1 + $0x8] sm:$0xff]  ;;  %v12_v7 = vld [vmem:[%s122_s1] sm:$0xff] }
   0x4   :  { %37 = vmatpush.msra.mxu0 %v18_v1  ;;  %v11_v8 = vld [vmem:[%s123_s0] sm:$0xff]  ;;  %vm50_vm2 = vcmp.lt.s32.totalorder %v49_v10, 3 }
   0x6   :  { %38 = vmatpush.msra.mxu0 %v17_v2 }
   0x8   :  { %39 = vmatpush.msra.mxu0 %v16_v3 }
   0xa   :  { %40 = vmatpush.msra.mxu0 %v15_v4 }
   0xc   :  { %41 = vmatpush.msra.mxu0 %v14_v5 }
   0xe   :  { %42 = vmatpush.msra.mxu0 %v13_v6 }
  0x10   :  { %43 = vmatpush.msra.mxu0 %v12_v7 }
  0x11   :  { %72 = vmatmul.msk.f32.vlgmr.msra.gmra.mxu0 %vm20_vm1, %v11_v8 }
  0x8e   :  { %v45_v11 = vpop.f32.mrf.mxu0 }
  0x8f   :  { %v51_v12 = vsel %vm50_vm2, %v45_v11, -1e+30 }
  0x90   :  { %v53_v13 = vsel %vm52_vm3, %v51_v12, -inf }
  0x91   :  { %54 = vmax.xlane.f32.xlu0 %v53_v13 }
 0x104   :  { %v55_v14 = vpop.xlane.xlu0 %54 }
 0x105   :  { %v56_v15 = vsub.f32 %v51_v12, %v55_v14 }
 0x107   :  { %v57_v16 = vmul.f32 1.442695, %v56_v15 }
 0x109   :  { %73 = vpow2.f32 %v57_v16 }
 0x10f   :  { %v74_v17 = vpop.eup %73 }
 0x110   :  { %v59_v18 = vsel %vm52_vm3, %v74_v17, 0.0 }
 0x111   :  { %60 = vadd.xlane.f32.xlu0 %v59_v18 }
 0x184   :  { %v61_v19 = vpop.xlane.xlu0 %60 }
 0x185   :  { %75 = vlog2.f32 %v61_v19 }
 0x18b   :  { %v76_v20 = vpop.eup %75 }
 0x18c   :  { %v63_v21 = vmul.f32 0.6931472, %v76_v20 }
 0x18e   :  { %v64_v22 = vsub.f32 %v56_v15, %v63_v21 }
 0x190   :  { %66 = vst.msk [vmem:[%s124_s2] sm:$0xff] %vm65_vm4, %v64_v22 }

</bundles_post_ra>
